<compile_context>
chip_gen: v6e
topology: v6e:2x2x1
jax: 0.10.0
libtpu: 0.0.40
codegen_flags: <defaults>
</compile_context>

<pallas_src>
import functools

import jax
import jax.numpy as jnp
import numpy as np
from jax.experimental import pallas as pl
from jax.experimental.pallas import tpu as pltpu


# ---------------------------------------------------------------------------
# Kernel
# ---------------------------------------------------------------------------
def _pool_kernel(a_ref, x_ref, b_ref, o_ref, rp_ref, *, bc, n_t, scale):
    """One grid step.

    a_ref : (1, BO, BH)    banded slice of the composed row-pooling matrix
                           (t == 0 -> previous H block piece, t == n_t-1 -> main)
    x_ref : (bc, BH, W)    band-limited slice of the input planes
    b_ref : (W, WOUT)      composed column-pooling matrix (integer valued)
    o_ref : (bc, BO, WOUT) output block (written only at the last t step)
    rp_ref: (bc, BO, W)    f32 row-pooled accumulator (lives across the t axis)
    """
    t = pl.program_id(2)
    a = a_ref[0]                                   # (BO, BH)

    # ---- H pooling: per-plane 2-D MXU matmuls with a stationary banded A ----
    @pl.when(t == 0)
    def _init():
        for b in range(bc):
            rp_ref[b] = jnp.dot(a, x_ref[b], preferred_element_type=jnp.float32)

    if n_t > 1:
        @pl.when(t != 0)
        def _accumulate():
            for b in range(bc):
                rp_ref[b] = rp_ref[b] + jnp.dot(
                    a, x_ref[b], preferred_element_type=jnp.float32)

    # ---- W pooling: one big 2-D MXU matmul over every plane in the block ----
    @pl.when(t == n_t - 1)
    def _finalize():
        bmat = b_ref[...]
        bo, wdim = rp_ref.shape[1], rp_ref.shape[2]
        if bo % 8 == 0 or bc == 1:
            # Layout-free merge of (bc, BO) -> bc*BO: single wide matmul.
            rp2 = rp_ref[...].reshape(bc * bo, wdim)
            out2 = jnp.dot(rp2, bmat, preferred_element_type=jnp.float32) * scale
            o_ref[...] = out2.reshape(o_ref.shape).astype(o_ref.dtype)
        else:
            # Tiny fallback (toy shapes where BO % 8 != 0): avoid a relayout.
            for b in range(bc):
                outb = jnp.dot(rp_ref[b], bmat,
                               preferred_element_type=jnp.float32) * scale
                o_ref[b] = outb.astype(o_ref.dtype)


# ---------------------------------------------------------------------------
# Host-side construction of the composed (integer valued) pooling matrices
# ---------------------------------------------------------------------------
def _avgpool_matrices(h, w, sampling_times):
    """Compose `sampling_times` AvgPool2d(3,2,1) stages.  Scale NOT folded in."""
    a = np.eye(h, dtype=np.float32)
    b = np.eye(w, dtype=np.float32)
    ch, cw = h, w
    for _ in range(sampling_times):
        ho = (ch - 1) // 2 + 1
        wo = (cw - 1) // 2 + 1
        rows = np.arange(ch)
        oi = np.arange(ho)
        ai = ((rows[None, :] >= 2 * oi[:, None] - 1)
              & (rows[None, :] <= 2 * oi[:, None] + 1)).astype(np.float32)
        cols = np.arange(cw)
        oj = np.arange(wo)
        bi = ((cols[:, None] >= 2 * oj[None, :] - 1)
              & (cols[:, None] <= 2 * oj[None, :] + 1)).astype(np.float32)
        a = ai @ a                       # (ho, h)
        b = b @ bi                       # (w, wo)
        ch, cw = ho, wo
    return a, b, ch, cw


def _split_banded_rows(a_np, bo, bh):
    """Split A_comb into (prev-H-block, main-H-block) pieces.

    Row r (output block ob = r // bo) has its band entirely inside input
    blocks {ob-1, ob} because band width 2^s-1 <= BH, so the split is exact.
    """
    hout, h = a_np.shape
    row_blk = (np.arange(hout) // bo)[:, None]
    col_blk = (np.arange(h) // bh)[None, :]
    a_main = np.where(col_blk == row_blk, a_np, 0.0).astype(np.float32)
    a_prev = np.where(col_blk == row_blk - 1, a_np, 0.0).astype(np.float32)
    if not np.array_equal(a_main + a_prev, a_np):
        raise ValueError("banded split of the pooling matrix is not exact")
    return np.stack([a_prev, a_main], axis=0)     # (2, Hout, H)


# ---------------------------------------------------------------------------
# Tiling / VMEM budgeting
# ---------------------------------------------------------------------------
def _vmem_budget_bytes():
    """Generation-aware VMEM budget (v5e/v6e: 128 MiB phys, v7x: 64 MiB)."""
    try:
        cap = int(pltpu.get_tpu_info().vmem_capacity_bytes)
    except Exception:
        cap = 64 * 1024 * 1024            # conservative default (v7x physical)
    return max(int(cap * 0.70), 16 * 1024 * 1024)


def _choose_tiling(nc, h, w, hout, wout, sampling_times, itemsize, budget):
    stride = 2 ** sampling_times

    # --- Hout row-block size BO (band-limited A tiling).  Constraints:
    #   BO % 8 == 0 (sublane), BH = stride*BO % 128 == 0 (lane), BO | Hout.
    # If no legal tiling exists, fall back to one full-plane H block.
    bo = hout
    if h == stride * hout and hout > 1:
        req = max(8, 128 // stride)
        k = req
        while k < hout:
            if hout % k == 0:
                bo = k
                break
            k += req
    n_ob = hout // bo
    bh = stride * bo if n_ob > 1 else h
    n_t = 2 if n_ob > 1 else 1

    def vmem_bytes(bc):
        x_blk = 2 * bc * bh * w * itemsize            # double-buffered input planes
        a_blk = 2 * bo * bh * itemsize                # double-buffered A band block
        b_blk = 2 * w * wout * itemsize               # B_comb (constant, 2 bufs)
        o_blk = 2 * bc * bo * wout * itemsize         # double-buffered output
        rp = bc * bo * w * 4                          # f32 row-pool accumulator
        live = bc * bo * w * 4 + bc * bo * wout * 4   # in-flight f32 temporaries
        return x_blk + a_blk + b_blk + o_blk + rp + live

    divisors = [d for d in range(1, min(nc, 64) + 1) if nc % d == 0]
    fitting = [d for d in divisors if vmem_bytes(d) <= budget]
    if not fitting:
        bc = 1
    elif n_ob == 1 and nc >= 2:
        # No Hout grid axis: keep >= 2 grid steps so a second TensorCore
        # (v7x megacore) still gets work.  Harmless on single-TC chips.
        pref = [d for d in fitting if d <= max(1, nc // 2)]
        bc = max(pref) if pref else max(fitting)
    else:
        bc = max(fitting)
    return bc, bo, bh, n_ob, n_t


# ---------------------------------------------------------------------------
# Wrapper
# ---------------------------------------------------------------------------
@functools.partial(jax.jit, static_argnums=(1,))
def input_projection_a(x, sampling_times):
    """Pallas equivalent of InputProjectionA.forward (NCHW input).

    Compute/DMA dtype follows x.dtype: pass bf16 input for the bf16 MXU fast
    path (weights stay exact small integers; accumulation is f32); pass f32
    input for bit-accurate parity with the PyTorch reference.
    """
    sampling_times = int(sampling_times)
    if sampling_times <= 0:
        return x

    n, c, h, w = x.shape
    a_np, b_np, hout, wout = _avgpool_matrices(h, w, sampling_times)

    in_dt = x.dtype
    itemsize = jnp.dtype(in_dt).itemsize
    budget = _vmem_budget_bytes()
    nc = n * c

    bc, bo, bh, n_ob, n_t = _choose_tiling(
        nc, h, w, hout, wout, sampling_times, itemsize, budget)

    if n_t == 2:
        a_split = _split_banded_rows(a_np, bo, bh)     # (2, Hout, H)
    else:
        a_split = a_np[None]                           # (1, Hout, H)

    # Exact small integers -> safe to cast to bf16 as well as f32.
    a_dev = jnp.asarray(a_split, dtype=in_dt)
    b_dev = jnp.asarray(b_np, dtype=in_dt)
    xp = x.reshape(nc, h, w)
    scale = float((1.0 / 9.0) ** sampling_times)

    kernel = functools.partial(_pool_kernel, bc=bc, n_t=n_t, scale=scale)

    flops = 2.0 * nc * hout * (n_t * bh) * w + 2.0 * nc * hout * w * wout
    bytes_accessed = (nc * h * w + nc * hout * wout
                      + a_split.size + b_np.size) * itemsize

    def a_map(i, ob, t):
        return (t, ob, jnp.maximum(ob - (n_t - 1) + t, 0))

    def x_map(i, ob, t):
        return (i, jnp.maximum(ob - (n_t - 1) + t, 0), 0)

    out = pl.pallas_call(
        kernel,
        out_shape=jax.ShapeDtypeStruct((nc, hout, wout), in_dt),
        grid=(nc // bc, n_ob, n_t),
        in_specs=[
            pl.BlockSpec((1, bo, bh), a_map),            # banded A slice
            pl.BlockSpec((bc, bh, w), x_map),            # band-limited input rows
            pl.BlockSpec((w, wout), lambda i, ob, t: (0, 0)),   # B_comb (constant)
        ],
        out_specs=pl.BlockSpec((bc, bo, wout), lambda i, ob, t: (i, ob, 0)),
        scratch_shapes=[pltpu.VMEM((bc, bo, w), jnp.float32)],
        compiler_params=pltpu.CompilerParams(
            dimension_semantics=("parallel", "parallel", "arbitrary"),
            vmem_limit_bytes=int(budget),
        ),
        cost_estimate=pl.CostEstimate(
            flops=int(flops), transcendentals=0,
            bytes_accessed=int(bytes_accessed)),
    )(a_dev, xp, b_dev)

    return out.reshape(n, c, hout, wout)


class InputProjectionA:
    """Pallas equivalent of the PyTorch InputProjectionA module (no params)."""

    def __init__(self, samplingTimes):
        self.sampling_times = int(samplingTimes)

    def __call__(self, x):
        return input_projection_a(x, self.sampling_times)


# ---------------------------------------------------------------------------
# Pure-JAX reference: AvgPool2d(3, 2, padding=1, count_include_pad=True)
# ---------------------------------------------------------------------------
def _reference(x, sampling_times):
    for _ in range(sampling_times):
        s = jax.lax.reduce_window(
            x, 0.0, jax.lax.add,
            window_dimensions=(1, 1, 3, 3),
            window_strides=(1, 1, 2, 2),
            padding=[(0, 0), (0, 0), (1, 1), (1, 1)],
        )
        x = s / 9.0
    return x


if __name__ == "__main__":
    key = jax.random.PRNGKey(0)

    # --- small toy case (single H block fallback path) ---
    N, C, H, W = 2, 4, 16, 16
    sampling_times = 2
    x = jax.random.normal(key, (N, C, H, W), dtype=jnp.float32)

    model = InputProjectionA(sampling_times)
    out = jax.block_until_ready(model(x))
    ref = jax.block_until_ready(_reference(x, sampling_times))
    assert out.shape == ref.shape, (out.shape, ref.shape)
    assert jnp.allclose(out, ref, atol=1e-5, rtol=1e-5), float(
        jnp.max(jnp.abs(out - ref)))

    # --- a shape where the banded Hout grid (prev/main H blocks) kicks in ---
    x2 = jax.random.normal(jax.random.PRNGKey(1), (1, 3, 256, 128),
                           dtype=jnp.float32)
    out2 = jax.block_until_ready(input_projection_a(x2, 1))
    ref2 = jax.block_until_ready(_reference(x2, 1))
    assert out2.shape == ref2.shape, (out2.shape, ref2.shape)
    assert jnp.allclose(out2, ref2, atol=1e-5, rtol=1e-5), float(
        jnp.max(jnp.abs(out2 - ref2)))

    # --- bf16 fast path (weights stay exact integers; x is low precision) ---
    out_bf = jax.block_until_ready(
        input_projection_a(x.astype(jnp.bfloat16), sampling_times))
    assert jnp.allclose(out_bf.astype(jnp.float32), ref, atol=2e-2, rtol=2e-2)

    print("KERNEL_OK")
</pallas_src>

<mosaic_0001>
module attributes {stable_mosaic.version = 11 : i64} {
  func.func @_pool_kernel(%arg0: i32, %arg1: i32, %arg2: i32, %arg3: memref<1x4x16xf32, #tpu.memory_space<vmem>>, %arg4: memref<4x16x16xf32, #tpu.memory_space<vmem>>, %arg5: memref<16x4xf32, #tpu.memory_space<vmem>>, %arg6: memref<4x4x4xf32, #tpu.memory_space<vmem>>, %arg7: memref<4x4x16xf32, #tpu.memory_space<vmem>>) attributes {dimension_semantics = [#tpu.dimension_semantics<parallel>, #tpu.dimension_semantics<parallel>, #tpu.dimension_semantics<arbitrary>], iteration_bounds = array<i64: 2, 1, 1>, scalar_prefetch = 0 : i64, scratch_operands = 1 : i64, tpu.core_type = #tpu.core_type<tc>, window_params = [{transform_indices = @transform_0, window_bounds = array<i64: 1, 4, 16>}, {transform_indices = @transform_1, window_bounds = array<i64: 4, 16, 16>}, {pipeline_mode = #tpu.pipeline_mode<synchronous>, transform_indices = @transform_2, window_bounds = array<i64: 16, 4>}, {transform_indices = @transform_3, window_bounds = array<i64: 4, 4, 4>}]} {
    %c0 = arith.constant 0 : index
    %c0_0 = arith.constant 0 : index
    %c0_1 = arith.constant 0 : index
    %0 = vector.load %arg3[%c0, %c0_0, %c0_1] : memref<1x4x16xf32, #tpu.memory_space<vmem>>, vector<1x4x16xf32>
    %1 = vector.shape_cast %0 : vector<1x4x16xf32> to vector<4x16xf32>
    %c0_i32 = arith.constant 0 : i32
    %2 = arith.cmpi eq, %arg2, %c0_i32 : i32
    %3 = arith.extui %2 : i1 to i32
    %c0_i32_2 = arith.constant 0 : i32
    %4 = arith.cmpi ne, %3, %c0_i32_2 : i32
    scf.if %4 {
      %c0_5 = arith.constant 0 : index
      %c0_6 = arith.constant 0 : index
      %c0_7 = arith.constant 0 : index
      %8 = vector.load %arg4[%c0_5, %c0_6, %c0_7] : memref<4x16x16xf32, #tpu.memory_space<vmem>>, vector<1x16x16xf32>
      %9 = vector.shape_cast %8 : vector<1x16x16xf32> to vector<16x16xf32>
      %cst = arith.constant dense<0.000000e+00> : vector<4x16xf32>
      %10 = tpu.matmul %1, %9, %cst {dimension_numbers = #tpu.dot_dimension_numbers<[1], [0], [0], [1], [0, 0, 1, 1], [], []>} : vector<4x16xf32>, vector<16x16xf32>, vector<4x16xf32> -> vector<4x16xf32>
      %c0_8 = arith.constant 0 : index
      %c0_9 = arith.constant 0 : index
      %c0_10 = arith.constant 0 : index
      %11 = vector.load %arg7[%c0_8, %c0_9, %c0_10] : memref<4x4x16xf32, #tpu.memory_space<vmem>>, vector<1x4x16xf32>
      %12 = vector.shape_cast %11 : vector<1x4x16xf32> to vector<4x16xf32>
      %13 = vector.shape_cast %10 : vector<4x16xf32> to vector<1x4x16xf32>
      tpu.vector_store %arg7[%c0_8, %c0_9, %c0_10], %13 {strides = array<i32>} : memref<4x4x16xf32, #tpu.memory_space<vmem>>, vector<1x4x16xf32>,
      %c1 = arith.constant 1 : index
      %c0_11 = arith.constant 0 : index
      %c0_12 = arith.constant 0 : index
      %14 = vector.load %arg4[%c1, %c0_11, %c0_12] : memref<4x16x16xf32, #tpu.memory_space<vmem>>, vector<1x16x16xf32>
      %15 = vector.shape_cast %14 : vector<1x16x16xf32> to vector<16x16xf32>
      %cst_13 = arith.constant dense<0.000000e+00> : vector<4x16xf32>
      %16 = tpu.matmul %1, %15, %cst_13 {dimension_numbers = #tpu.dot_dimension_numbers<[1], [0], [0], [1], [0, 0, 1, 1], [], []>} : vector<4x16xf32>, vector<16x16xf32>, vector<4x16xf32> -> vector<4x16xf32>
      %c1_14 = arith.constant 1 : index
      %c0_15 = arith.constant 0 : index
      %c0_16 = arith.constant 0 : index
      %17 = vector.load %arg7[%c1_14, %c0_15, %c0_16] : memref<4x4x16xf32, #tpu.memory_space<vmem>>, vector<1x4x16xf32>
      %18 = vector.shape_cast %17 : vector<1x4x16xf32> to vector<4x16xf32>
      %19 = vector.shape_cast %16 : vector<4x16xf32> to vector<1x4x16xf32>
      tpu.vector_store %arg7[%c1_14, %c0_15, %c0_16], %19 {strides = array<i32>} : memref<4x4x16xf32, #tpu.memory_space<vmem>>, vector<1x4x16xf32>,
      %c2 = arith.constant 2 : index
      %c0_17 = arith.constant 0 : index
      %c0_18 = arith.constant 0 : index
      %20 = vector.load %arg4[%c2, %c0_17, %c0_18] : memref<4x16x16xf32, #tpu.memory_space<vmem>>, vector<1x16x16xf32>
      %21 = vector.shape_cast %20 : vector<1x16x16xf32> to vector<16x16xf32>
      %cst_19 = arith.constant dense<0.000000e+00> : vector<4x16xf32>
      %22 = tpu.matmul %1, %21, %cst_19 {dimension_numbers = #tpu.dot_dimension_numbers<[1], [0], [0], [1], [0, 0, 1, 1], [], []>} : vector<4x16xf32>, vector<16x16xf32>, vector<4x16xf32> -> vector<4x16xf32>
      %c2_20 = arith.constant 2 : index
      %c0_21 = arith.constant 0 : index
      %c0_22 = arith.constant 0 : index
      %23 = vector.load %arg7[%c2_20, %c0_21, %c0_22] : memref<4x4x16xf32, #tpu.memory_space<vmem>>, vector<1x4x16xf32>
      %24 = vector.shape_cast %23 : vector<1x4x16xf32> to vector<4x16xf32>
      %25 = vector.shape_cast %22 : vector<4x16xf32> to vector<1x4x16xf32>
      tpu.vector_store %arg7[%c2_20, %c0_21, %c0_22], %25 {strides = array<i32>} : memref<4x4x16xf32, #tpu.memory_space<vmem>>, vector<1x4x16xf32>,
      %c3 = arith.constant 3 : index
      %c0_23 = arith.constant 0 : index
      %c0_24 = arith.constant 0 : index
      %26 = vector.load %arg4[%c3, %c0_23, %c0_24] : memref<4x16x16xf32, #tpu.memory_space<vmem>>, vector<1x16x16xf32>
      %27 = vector.shape_cast %26 : vector<1x16x16xf32> to vector<16x16xf32>
      %cst_25 = arith.constant dense<0.000000e+00> : vector<4x16xf32>
      %28 = tpu.matmul %1, %27, %cst_25 {dimension_numbers = #tpu.dot_dimension_numbers<[1], [0], [0], [1], [0, 0, 1, 1], [], []>} : vector<4x16xf32>, vector<16x16xf32>, vector<4x16xf32> -> vector<4x16xf32>
      %c3_26 = arith.constant 3 : index
      %c0_27 = arith.constant 0 : index
      %c0_28 = arith.constant 0 : index
      %29 = vector.load %arg7[%c3_26, %c0_27, %c0_28] : memref<4x4x16xf32, #tpu.memory_space<vmem>>, vector<1x4x16xf32>
      %30 = vector.shape_cast %29 : vector<1x4x16xf32> to vector<4x16xf32>
      %31 = vector.shape_cast %28 : vector<4x16xf32> to vector<1x4x16xf32>
      tpu.vector_store %arg7[%c3_26, %c0_27, %c0_28], %31 {strides = array<i32>} : memref<4x4x16xf32, #tpu.memory_space<vmem>>, vector<1x4x16xf32>,
    } else {
    }
    %c0_i32_3 = arith.constant 0 : i32
    %5 = arith.cmpi eq, %arg2, %c0_i32_3 : i32
    %6 = arith.extui %5 : i1 to i32
    %c0_i32_4 = arith.constant 0 : i32
    %7 = arith.cmpi ne, %6, %c0_i32_4 : i32
    scf.if %7 {
      %c0_5 = arith.constant 0 : index
      %c0_6 = arith.constant 0 : index
      %8 = vector.load %arg5[%c0_5, %c0_6] : memref<16x4xf32, #tpu.memory_space<vmem>>, vector<16x4xf32>
      %c0_7 = arith.constant 0 : index
      %c0_8 = arith.constant 0 : index
      %c0_9 = arith.constant 0 : index
      %9 = vector.load %arg7[%c0_7, %c0_8, %c0_9] : memref<4x4x16xf32, #tpu.memory_space<vmem>>, vector<1x4x16xf32>
      %10 = vector.shape_cast %9 : vector<1x4x16xf32> to vector<4x16xf32>
      %cst = arith.constant dense<0.000000e+00> : vector<4x4xf32>
      %11 = tpu.matmul %10, %8, %cst {dimension_numbers = #tpu.dot_dimension_numbers<[1], [0], [0], [1], [0, 0, 1, 1], [], []>} : vector<4x16xf32>, vector<16x4xf32>, vector<4x4xf32> -> vector<4x4xf32>
      %cst_10 = arith.constant 0.0123456791 : f32
      %12 = vector.broadcast %cst_10 : f32 to vector<4x4xf32>
      %13 = arith.mulf %11, %12 : vector<4x4xf32>
      %c0_11 = arith.constant 0 : index
      %c0_12 = arith.constant 0 : index
      %c0_13 = arith.constant 0 : index
      %14 = vector.load %arg6[%c0_11, %c0_12, %c0_13] : memref<4x4x4xf32, #tpu.memory_space<vmem>>, vector<1x4x4xf32>
      %15 = vector.shape_cast %14 : vector<1x4x4xf32> to vector<4x4xf32>
      %16 = vector.shape_cast %13 : vector<4x4xf32> to vector<1x4x4xf32>
      tpu.vector_store %arg6[%c0_11, %c0_12, %c0_13], %16 {strides = array<i32>} : memref<4x4x4xf32, #tpu.memory_space<vmem>>, vector<1x4x4xf32>,
      %c1 = arith.constant 1 : index
      %c0_14 = arith.constant 0 : index
      %c0_15 = arith.constant 0 : index
      %17 = vector.load %arg7[%c1, %c0_14, %c0_15] : memref<4x4x16xf32, #tpu.memory_space<vmem>>, vector<1x4x16xf32>
      %18 = vector.shape_cast %17 : vector<1x4x16xf32> to vector<4x16xf32>
      %cst_16 = arith.constant dense<0.000000e+00> : vector<4x4xf32>
      %19 = tpu.matmul %18, %8, %cst_16 {dimension_numbers = #tpu.dot_dimension_numbers<[1], [0], [0], [1], [0, 0, 1, 1], [], []>} : vector<4x16xf32>, vector<16x4xf32>, vector<4x4xf32> -> vector<4x4xf32>
      %cst_17 = arith.constant 0.0123456791 : f32
      %20 = vector.broadcast %cst_17 : f32 to vector<4x4xf32>
      %21 = arith.mulf %19, %20 : vector<4x4xf32>
      %c1_18 = arith.constant 1 : index
      %c0_19 = arith.constant 0 : index
      %c0_20 = arith.constant 0 : index
      %22 = vector.load %arg6[%c1_18, %c0_19, %c0_20] : memref<4x4x4xf32, #tpu.memory_space<vmem>>, vector<1x4x4xf32>
      %23 = vector.shape_cast %22 : vector<1x4x4xf32> to vector<4x4xf32>
      %24 = vector.shape_cast %21 : vector<4x4xf32> to vector<1x4x4xf32>
      tpu.vector_store %arg6[%c1_18, %c0_19, %c0_20], %24 {strides = array<i32>} : memref<4x4x4xf32, #tpu.memory_space<vmem>>, vector<1x4x4xf32>,
      %c2 = arith.constant 2 : index
      %c0_21 = arith.constant 0 : index
      %c0_22 = arith.constant 0 : index
      %25 = vector.load %arg7[%c2, %c0_21, %c0_22] : memref<4x4x16xf32, #tpu.memory_space<vmem>>, vector<1x4x16xf32>
      %26 = vector.shape_cast %25 : vector<1x4x16xf32> to vector<4x16xf32>
      %cst_23 = arith.constant dense<0.000000e+00> : vector<4x4xf32>
      %27 = tpu.matmul %26, %8, %cst_23 {dimension_numbers = #tpu.dot_dimension_numbers<[1], [0], [0], [1], [0, 0, 1, 1], [], []>} : vector<4x16xf32>, vector<16x4xf32>, vector<4x4xf32> -> vector<4x4xf32>
      %cst_24 = arith.constant 0.0123456791 : f32
      %28 = vector.broadcast %cst_24 : f32 to vector<4x4xf32>
      %29 = arith.mulf %27, %28 : vector<4x4xf32>
      %c2_25 = arith.constant 2 : index
      %c0_26 = arith.constant 0 : index
      %c0_27 = arith.constant 0 : index
      %30 = vector.load %arg6[%c2_25, %c0_26, %c0_27] : memref<4x4x4xf32, #tpu.memory_space<vmem>>, vector<1x4x4xf32>
      %31 = vector.shape_cast %30 : vector<1x4x4xf32> to vector<4x4xf32>
      %32 = vector.shape_cast %29 : vector<4x4xf32> to vector<1x4x4xf32>
      tpu.vector_store %arg6[%c2_25, %c0_26, %c0_27], %32 {strides = array<i32>} : memref<4x4x4xf32, #tpu.memory_space<vmem>>, vector<1x4x4xf32>,
      %c3 = arith.constant 3 : index
      %c0_28 = arith.constant 0 : index
      %c0_29 = arith.constant 0 : index
      %33 = vector.load %arg7[%c3, %c0_28, %c0_29] : memref<4x4x16xf32, #tpu.memory_space<vmem>>, vector<1x4x16xf32>
      %34 = vector.shape_cast %33 : vector<1x4x16xf32> to vector<4x16xf32>
      %cst_30 = arith.constant dense<0.000000e+00> : vector<4x4xf32>
      %35 = tpu.matmul %34, %8, %cst_30 {dimension_numbers = #tpu.dot_dimension_numbers<[1], [0], [0], [1], [0, 0, 1, 1], [], []>} : vector<4x16xf32>, vector<16x4xf32>, vector<4x4xf32> -> vector<4x4xf32>
      %cst_31 = arith.constant 0.0123456791 : f32
      %36 = vector.broadcast %cst_31 : f32 to vector<4x4xf32>
      %37 = arith.mulf %35, %36 : vector<4x4xf32>
      %c3_32 = arith.constant 3 : index
      %c0_33 = arith.constant 0 : index
      %c0_34 = arith.constant 0 : index
      %38 = vector.load %arg6[%c3_32, %c0_33, %c0_34] : memref<4x4x4xf32, #tpu.memory_space<vmem>>, vector<1x4x4xf32>
      %39 = vector.shape_cast %38 : vector<1x4x4xf32> to vector<4x4xf32>
      %40 = vector.shape_cast %37 : vector<4x4xf32> to vector<1x4x4xf32>
      tpu.vector_store %arg6[%c3_32, %c0_33, %c0_34], %40 {strides = array<i32>} : memref<4x4x4xf32, #tpu.memory_space<vmem>>, vector<1x4x4xf32>,
    } else {
    }
    return
  }
  func.func @transform_0(%arg0: i32, %arg1: i32, %arg2: i32) -> (i32, i32, i32) {
    %c0_i32 = arith.constant 0 : i32
    %0 = arith.subi %arg1, %c0_i32 : i32
    %1 = arith.addi %0, %arg2 : i32
    %c0_i32_0 = arith.constant 0 : i32
    %2 = arith.maxsi %1, %c0_i32_0 : i32
    %c0_i32_1 = arith.constant 0 : i32
    return %arg2, %arg1, %2 : i32, i32, i32
  }
  func.func @transform_1(%arg0: i32, %arg1: i32, %arg2: i32) -> (i32, i32, i32) {
    %c0_i32 = arith.constant 0 : i32
    %0 = arith.subi %arg1, %c0_i32 : i32
    %1 = arith.addi %0, %arg2 : i32
    %c0_i32_0 = arith.constant 0 : i32
    %2 = arith.maxsi %1, %c0_i32_0 : i32
    %c0_i32_1 = arith.constant 0 : i32
    %c0_i32_2 = arith.constant 0 : i32
    return %arg0, %2, %c0_i32_1 : i32, i32, i32
  }
  func.func @transform_2(%arg0: i32, %arg1: i32, %arg2: i32) -> (i32, i32) {
    %c0_i32 = arith.constant 0 : i32
    %c0_i32_0 = arith.constant 0 : i32
    %c0_i32_1 = arith.constant 0 : i32
    return %c0_i32, %c0_i32_0 : i32, i32
  }
  func.func @transform_3(%arg0: i32, %arg1: i32, %arg2: i32) -> (i32, i32, i32) {
    %c0_i32 = arith.constant 0 : i32
    %c0_i32_0 = arith.constant 0 : i32
    return %arg0, %arg1, %c0_i32 : i32, i32, i32
  }
}

</mosaic_0001>

<bundles_post_ra>
// kernel: input_projection_a.1
= control target key start
LH: loop header
LB: loop body
LE: loop exit
PB: predicated region body
PF: predicated region fallthrough
CT: control target
= control target key end

     0   :  { %8 = vsyncpa [#allocation4], 0  ;;  %s1670_s0 = inlined_call_operand.vmem [shape: f32[1,4,16], index: 0, kind: input, shape index: {}]   ;;  %s1671_s1 = inlined_call_operand.hbm [shape: f32[8,16,16], index: 1, kind: input, shape index: {}]   ;;  %s1672_s2 = inlined_call_operand.hbm [shape: f32[16,4], index: 2, kind: input, shape index: {}]   ;;  %s1673_s3 = inlined_call_operand.hbm [shape: f32[8,4,4], index: 3, kind: output, shape index: {}]  }
   0x1   :  { %10 = vsyncpa [#allocation4 + $0x1], 0 }
   0x2   :  { %11 = vsyncpa [#allocation7], 0 }
   0x3   :  { %12 = vsyncpa [#allocation5], 0 }
   0x4   :  { %14 = vsyncpa [#allocation5 + $0x1], 0  ;;  %s1425_s12 = smov 0   ;;  %s1427_s13 = smov 0  }
   0x5   :  { %s1429_s14 = smov 0   ;;  %s1431_s15 = smov 0  }
   0x6   :  { %s1433_s16 = smov 0   ;;  %s1435_s17 = smov 0  }
   0x7 LB: > { %s1058_s18 = sadd.s32 4294967295, %s1394_s17   ;;  %s1059_s19 = sadd.s32 4294967294, %s1394_s17   ;;  %s1394_s17 = sphi %s1435_s17, %s20_s17   ;;  %s1390_s16 = sphi %s1433_s16, %s1695_s16   ;;  %s1386_s15 = sphi %s1431_s15, %s1694_s15   ;;  %s1382_s14 = sphi %s1429_s14, %s1693_s14   ;;  %s1378_s13 = sphi %s1427_s13, %s1692_s13   ;;  %s1374_s12 = sphi %s1425_s12, %s1691_s12  }
   0x8   : > { %p103_p0 = scmp.ne.s32.totalorder %s1378_s13, %s1374_s12  ;;  %p1459_p1 = scmp.eq.s32.totalorder %s1058_s18, 0 }
   0x9   : > { %p1463_p2 = scmp.eq.s32.totalorder %s1058_s18, 1  ;;  %p156_p3 = scmp.eq.s32.totalorder %s1059_s19, 1 }
   0xa   : > { %p1469_p4 = por %p1459_p1, %p103_p0  ;;  %p1060_p5 = scmp.ge.s32.totalorder %s1394_s17, 1 }
   0xb   : > { %p1474_p6 = por %p156_p3, %p103_p0  ;;  %p163_p7 = scmp.lt.s32.totalorder %s1394_s17, 3 }
   0xc   : > { %s1679_s22 = scalar_select %p1469_p4, 1, 0 }
   0xd   : > { %s1680_s23 = scalar_select %p1474_p6, 1, 0 }
   0xe   : > { %p1479_p8 = pnand %p1060_p5, %p163_p7  ;;  %s1396_s25 = smov [#allocation6]  }
   0xf   : > { %s194_s26 = sshll.u32 %s1396_s25, 4  ;;  %s39_s28 = sadd.s32 1, %s1390_s16  ;;  %s195_s26 = int_to_ptr.vmem [resolvable:$true] %s194_s26 }
  0x10   : > { %p1185_p9 = pneg %p1479_p8  ;;  %s1267_s29 = scalar_lea.vmem %s195_s26, 256 }
  0x11   : > { %p1268_p13 = scmp.ne.s32.totalorder %s195_s26, %s1267_s29  ;;  %p1275_p5 = scmp.lt.s32.totalorder %s195_s26, %s195_s26 }
  0x12   : > { %p1488_p11 = pnand %p1185_p9, %p1459_p1  ;;  %p1276_p7 = scmp.lt.s32.totalorder %s1267_s29, %s1267_s29 }
  0x14   : > { %p1258_p12 = pneg %p1488_p11  ;;  %p1277_p6 = por %p1276_p7, %p1275_p5 }
  0x16   : > { %p1270_p0 = pnand %p1268_p13, %p1258_p12 }
  0x18   : > { %p1271_p3 = pneg %p1270_p0 }
  0x1a   : > { %p1278_p4 = pnand %p1277_p6, %p1271_p3 }
  0x1c   : > { %1281 = shalt.err (!%p1278_p4)
}
  0x1d   : > { %s1675_s30 = smov 128   ;;  %s1676_s4 = smov 8  }
  0x1e   : > { %1188 = dma.hbm_to_vmem [thread:$0]  (!%p1488_p11), %s1672_s2, 256, %s195_s26, [#allocation7], %s1675_s30, %s1675_s30, %s1676_s4  }
  0x1f   : > { %p41_p4 = scmp.ge.s32.totalorder %s39_s28, 2  ;;  %s90_s7 = sadd.s32 1, %s1382_s14 }
  0x20   : > { %p97_p6 = scmp.ne.s32.totalorder %s1382_s14, %s1378_s13  ;;  %p98_p9 = scmp.eq.s32.totalorder %s1394_s17, 0 }
  0x21   : > { %s1697_s28 = smov (%p41_p4, %s39_s28), 0  ;;  %p1198_p0 = scmp.lt.s32.totalorder %s1394_s17, 2 }
  0x22   : > { %p1509_p12 = por %p98_p9, %p97_p6  ;;  %p1515_p13 = por %p1463_p2, %p97_p6 }
  0x23   : > { %s85_s10 = ssub.s32 %s1390_s16, %s1697_s28  ;;  %s208_s11 = sand.u32 1, %s1382_s14  }
  0x24   : > { %p88_p11 = scmp.eq.s32.totalorder %s85_s10, 0  ;;  %s1064_s18 = sshll.u32 %s208_s11, 6 }
  0x25   : > { %s1095_s25 = sshll.u32 %s1390_s16, 10  ;;  %s212_s5 = scalar_lea.vmem [#allocation3], %s1064_s18 }
  0x26   : > { %s1524_s19 = scalar_select %p88_p11, %s1382_s14, %s90_s7  }
  0x27   : > { %s224_s29 = scalar_lea.hbm %s1671_s1, %s1095_s25  ;;  %s225_s6 = sshll.u32 %s212_s5, 4  ;;  %s226_s6 = int_to_ptr.vmem [resolvable:$true] %s225_s6 }
  0x28   : > { %p1532_p2 = pnand %p1198_p0, %p1509_p12  ;;  %s209_s30 = scalar_lea.sflag [#allocation4], %s208_s11 }
  0x29   : > { %s1295_s10 = scalar_lea.vmem %s226_s6, 1024  ;;  %s1399_s7 = smov [#allocation3]  }
  0x2a   : > { %p1284_p3 = pneg %p1532_p2  ;;  %p1296_p5 = scmp.ne.s32.totalorder %s226_s6, %s1295_s10 }
  0x2b   : > { %s1300_s4 = sshll.u32 %s1399_s7, 4  ;;  %s1301_s4 = int_to_ptr.vmem [resolvable:$false] %s1300_s4 }
  0x2c   : > { %p1298_p7 = pnand %p1296_p5, %p1284_p3  ;;  %s1302_s25 = scalar_lea.vmem %s1301_s4, 2048 }
  0x2d   : > { %p1303_p6 = scmp.lt.s32.totalorder %s226_s6, %s1301_s4  ;;  %p1304_p9 = scmp.lt.s32.totalorder %s1302_s25, %s1295_s10 }
  0x2e   : > { %p1299_p4 = pneg %p1298_p7 }
  0x2f   : > { %p1305_p11 = por %p1304_p9, %p1303_p6 }
  0x31   : > { %p1306_p10 = pnand %p1305_p11, %p1299_p4 }
  0x33   : > { %1309 = shalt.err (!%p1306_p10)
}
  0x34   : > { %s1686_s8 = smov 8   ;;  %s1687_s18 = smov 128  }
  0x35   : > { %1192 = dma.hbm_to_vmem [thread:$0]  (!%p1532_p2), %s224_s29, 1024, %s226_s6, %s209_s30, %s1687_s18, %s1687_s18, %s1686_s8  }
  0x36   : > { %237 = sbr.rel (%p1479_p8) target bundleno = 484 (0x1e4), region = 32  ;;  %s1546_s11 = sand.u32 (!%p1479_p8), 1, %s1378_s13  }
  0x37   : > { %s1069_s4 = sshll.u32 (!%p1479_p8), %s1546_s11, 6  ;;  %s240_s26 = scalar_lea.sflag (!%p1479_p8), [#allocation4], %s1546_s11 }
  0x38   : > { %s1550_s27 = scalar_lea.vmem (!%p1479_p8), [#allocation3], %s1069_s4  ;;  %p1688_p10 = scmp.ne.s32.totalorder (!%p1479_p8), %s1679_s22, 0 }
  0x3b   : > { %1361 = dma.done.wait (%p1688_p10), %s240_s26, 1024  }
  0x3c   : > { %1363 = vsyncadd (%p1688_p10), %s240_s26, 4294966272 }
  0x3d   : > { %1365 = dma.done.wait (%p1459_p1), [#allocation7], 256  }
  0x3e   : > { %1367 = vsyncadd (%p1459_p1), [#allocation7], 4294967040  ;;  %v1400_v0 = vmov 0.0   ;;  %vm1401_vm0 = vmmov 0   ;;  %v311_v1 = vld [vmem:[%s1550_s27 + $0x8] sm:$0xff]  ;;  %v1074_v2 = vld [vmem:[%s1550_s27 + $0x18] sm:$0xff] }
  0x3f   : > { %1121 = vmatprep.subr.mxu0 %v1400_v0  ;;  %1128 = vmatprep.subr.mxu1 %v1400_v0  ;;  %v310_v3 = vld [vmem:[%s1550_s27] sm:$0xff]  ;;  %v1073_v4 = vld [vmem:[%s1550_s27 + $0x10] sm:$0xff]  ;;  %vm312_vm1 = vcmask 130048   ;;  %v1077_v6 = vld [vmem:[%s1550_s27 + $0x28] sm:$0xff]  ;;  %vm386_vm2 = vcmask 125952   ;;  %s1071_s24 = sshll.u32 %s1546_s11, 4 }
  0x40   : > { %1125 = vmatprep.mubr.msk.f32.mxu0 %vm1401_vm0, %v1400_v0  ;;  %1132 = vmatprep.mubr.msk.f32.mxu1 %vm1401_vm0, %v1400_v0  ;;  %v305_v5 = vld [vmem:[%s1670_s0] sm:$0xf]  ;;  %v1080_v7 = vld [vmem:[%s1550_s27 + $0x38] sm:$0xff]  ;;  %v1076_v8 = vld [vmem:[%s1550_s27 + $0x20] sm:$0xff]  ;;  %vm690_vm3 = vcmask 27648   ;;  %s282_s30 = scalar_lea.vmem [#allocation8], %s1071_s24 }
  0x41   : > { %1122 = vmatpush3.msra.mxu0 %v311_v1  ;;  %1129 = vmatpush3.msra.mxu1 %v1074_v2  ;;  %v1079_v9 = vld [vmem:[%s1550_s27 + $0x30] sm:$0xff]  ;;  %v614_v10 = vld [vmem:[#allocation6 + $0x8] sm:$0xff]  ;;  %v613_v11 = vld [vmem:[#allocation6] sm:$0xff]  ;;  %s938_s29 = sshll.u32 %s282_s30, 4  ;;  %s1096_s5 = sshll.u32 %s1386_s15, 8  ;;  %s1615_s29 = int_to_ptr.vmem [resolvable:$true] %s938_s29 }
  0x42   : > { %1123 = vmatprep.subr.mxu0 %v1400_v0  ;;  %1130 = vmatprep.subr.mxu1 %v1400_v0  ;;  %s1620_s10 = scalar_lea.hbm %s1673_s3, %s1096_s5  ;;  %s924_s15 = scalar_lea.sflag [#allocation5], %s1546_s11 }
  0x43   : > { %1124 = vmatpush3.msra.mxu0 %v310_v3  ;;  %1131 = vmatpush3.msra.mxu1 %v1073_v4  ;;  %s1310_s7 = scalar_lea.vmem %s1615_s29, 256  ;;  %s1402_s25 = smov [#allocation8]  }
  0x44   : > { %1126 = vmatmul.mubr.msk.f32.vlgmr.msra.gmra.mxu0 %vm312_vm1, %v305_v5  ;;  %1133 = vmatmul.mubr.msk.f32.vlgmr.msra.gmra.mxu1 %vm312_vm1, %v305_v5  ;;  %p1311_p1 = scmp.ne.s32.totalorder %s1615_s29, %s1310_s7  ;;  %s1314_s8 = sshll.u32 %s1402_s25, 4  ;;  %s1315_s8 = int_to_ptr.vmem [resolvable:$false] %s1314_s8 }
  0x45   : > { %1135 = vmatprep.subr.mxu0 %v1400_v0  ;;  %1142 = vmatprep.subr.mxu1 %v1400_v0  ;;  %s1316_s18 = scalar_lea.vmem %s1315_s8, 512  ;;  %p1317_p0 = scmp.lt.s32.totalorder %s1615_s29, %s1315_s8 }
  0x46   : > { %1136 = vmatpush3.msra.mxu0 %v1077_v6  ;;  %1143 = vmatpush3.msra.mxu1 %v1080_v7  ;;  %p1312_p8 = pnand %p1311_p1, %p1515_p13  ;;  %p1318_p2 = scmp.lt.s32.totalorder %s1316_s18, %s1310_s7 }
  0x47   : > { %1137 = vmatprep.subr.mxu0 %v1400_v0  ;;  %1144 = vmatprep.subr.mxu1 %v1400_v0 }
  0x48   : > { %1138 = vmatpush3.msra.mxu0 %v1076_v8  ;;  %1139 = vmatprep.mubr.msk.f32.mxu0 %vm1401_vm0, %v1400_v0  ;;  %p1313_p12 = pneg %p1312_p8  ;;  %p1319_p3 = por %p1318_p2, %p1317_p0 }
  0x49   : > { %1145 = vmatpush3.msra.mxu1 %v1079_v9  ;;  %1146 = vmatprep.mubr.msk.f32.mxu1 %vm1401_vm0, %v1400_v0 }
  0x4a   : > { %1140 = vmatmul.mubr.msk.f32.vlgmr.msra.gmra.mxu0 %vm312_vm1, %v305_v5  ;;  %1147 = vmatmul.mubr.msk.f32.vlgmr.msra.gmra.mxu1 %vm312_vm1, %v305_v5  ;;  %p1320_p5 = pnand %p1319_p3, %p1313_p12 }
  0x4b   : > { %1149 = vmatprep.subr.mxu0 %v1400_v0  ;;  %1156 = vmatprep.subr.mxu1 %v1400_v0 }
  0x4c   : > { %1153 = vmatprep.mubr.msk.f32.mxu0 %vm1401_vm0, %v1400_v0  ;;  %1160 = vmatprep.mubr.msk.f32.mxu1 %vm1401_vm0, %v1400_v0 }
  0x4d   : > { %1150 = vmatpush3.msra.mxu0 %v614_v10  ;;  %1157 = vmatpush3.msra.mxu1 %v614_v10 }
  0x4e   : > { %1151 = vmatprep.subr.mxu0 %v1400_v0  ;;  %1158 = vmatprep.subr.mxu1 %v1400_v0 }
  0x4f   : > { %1152 = vmatpush3.msra.mxu0 %v613_v11  ;;  %1159 = vmatpush3.msra.mxu1 %v613_v11 }
  0x50   : > { %1163 = vmatprep.subr.mxu0 %v1400_v0  ;;  %1170 = vmatprep.subr.mxu1 %v1400_v0 }
 0x104   : > { %v382_v12 = vpop.f32.mrf.mxu0  ;;  %v457_v13 = vpop.f32.mrf.mxu1 }
 0x105   : > { %387 = vst.msk [vmem:[#allocation2] sm:$0xf] %vm386_vm2, %v382_v12  ;;  %462 = vst.msk [vmem:[#allocation2 + $0x4] sm:$0xf] %vm386_vm2, %v457_v13 }
 0x106   : > { %v1127_v14 = vpop.f32.mrf.mxu0  ;;  %v1134_v15 = vpop.f32.mrf.mxu1 }
 0x10a   : > { %v532_v16 = vpop.f32.mrf.mxu0  ;;  %v607_v17 = vpop.f32.mrf.mxu1 }
 0x10b   : > { %537 = vst.msk [vmem:[#allocation2 + $0x8] sm:$0xf] %vm386_vm2, %v532_v16  ;;  %612 = vst.msk [vmem:[#allocation2 + $0xc] sm:$0xf] %vm386_vm2, %v607_v17 }
 0x10c   : > { %v1141_v18 = vpop.f32.mrf.mxu0  ;;  %v1148_v19 = vpop.f32.mrf.mxu1  ;;  %v615_v20 = vld [vmem:[#allocation2] sm:$0xf]  ;;  %v692_v21 = vld [vmem:[#allocation2 + $0x4] sm:$0xf] }
 0x10d   : > { %1154 = vmatmul.mubr.msk.f32.vlgmr.msra.gmra.mxu0 %vm312_vm1, %v615_v20  ;;  %1161 = vmatmul.mubr.msk.f32.vlgmr.msra.gmra.mxu1 %vm312_vm1, %v692_v21 }
 0x10e   : > { %1164 = vmatpush3.msra.mxu0 %v614_v10  ;;  %1171 = vmatpush3.msra.mxu1 %v614_v10 }
 0x10f   : > { %1165 = vmatprep.subr.mxu0 %v1400_v0  ;;  %1172 = vmatprep.subr.mxu1 %v1400_v0 }
 0x110   : > { %1166 = vmatpush3.msra.mxu0 %v613_v11  ;;  %1167 = vmatprep.mubr.msk.f32.mxu0 %vm1401_vm0, %v1400_v0 }
 0x111   : > { %1173 = vmatpush3.msra.mxu1 %v613_v11  ;;  %1174 = vmatprep.mubr.msk.f32.mxu1 %vm1401_vm0, %v1400_v0 }
 0x112   : > { %v769_v22 = vld [vmem:[#allocation2 + $0x8] sm:$0xf]  ;;  %v846_v23 = vld [vmem:[#allocation2 + $0xc] sm:$0xf] }
 0x113   : > { %1168 = vmatmul.mubr.msk.f32.vlgmr.msra.gmra.mxu0 %vm312_vm1, %v769_v22  ;;  %1175 = vmatmul.mubr.msk.f32.vlgmr.msra.gmra.mxu1 %vm312_vm1, %v846_v23 }
 0x1cd   : > { %v685_v24 = vpop.f32.mrf.mxu0  ;;  %v762_v25 = vpop.f32.mrf.mxu1 }
 0x1ce   : > { %v689_v26 = vmul.f32 0.012345679, %v685_v24  ;;  %v766_v27 = vmul.f32 0.012345679, %v762_v25 }
 0x1cf   : > { %v1155_v28 = vpop.f32.mrf.mxu0  ;;  %v1162_v29 = vpop.f32.mrf.mxu1 }
 0x1d0   : > { %691 = vst.msk [vmem:[%s282_s30] sm:$0xf] %vm690_vm3, %v689_v26  ;;  %1084 = vst.msk [vmem:[%s282_s30 + $0x4] sm:$0xf] %vm690_vm3, %v766_v27 }
 0x1d3   : > { %v839_v30 = vpop.f32.mrf.mxu0  ;;  %v916_v31 = vpop.f32.mrf.mxu1 }
 0x1d4   : > { %v843_v32 = vmul.f32 0.012345679, %v839_v30  ;;  %v920_v33 = vmul.f32 0.012345679, %v916_v31 }
 0x1d5   : > { %v1169_v34 = vpop.f32.mrf.mxu0  ;;  %v1176_v35 = vpop.f32.mrf.mxu1 }
 0x1d6   : > { %1086 = vst.msk [vmem:[%s282_s30 + $0x8] sm:$0xf] %vm690_vm3, %v843_v32  ;;  %1088 = vst.msk [vmem:[%s282_s30 + $0xc] sm:$0xf] %vm690_vm3, %v920_v33 }
 0x1d7   : > { %1323 = shalt.err (!%p1320_p5)
}
 0x1d8   : > { %s1324_s4 = scalar_lea.hbm %s1620_s10, 256  ;;  %s1328_s20 = scalar_lea.hbm %s1673_s3, 512 }
 0x1d9   : > { %p1325_p7 = scmp.ne.s32.totalorder %s1620_s10, %s1324_s4  ;;  %p1329_p9 = scmp.lt.s32.totalorder %s1620_s10, %s1673_s3 }
 0x1da   : > { %p1330_p11 = scmp.lt.s32.totalorder %s1328_s20, %s1324_s4 }
 0x1db   : > { %p1326_p4 = pnand %p1325_p7, %p1515_p13 }
 0x1dc   : > { %p1331_p10 = por %p1330_p11, %p1329_p9 }
 0x1dd   : > { %p1327_p6 = pneg %p1326_p4 }
 0x1df   : > { %p1332_p1 = pnand %p1331_p10, %p1327_p6 }
 0x1e1   : > { %1335 = shalt.err (!%p1332_p1)
}
 0x1e2   : > { %s1403_s30 = smov 64   ;;  %s1404_s5 = smov 4  }
 0x1e3   : > { %1183 = dma.vmem_to_hbm [thread:$0]  (%p1515_p13), %s1615_s29, 256, %s1620_s10, %s924_s15, %s1403_s30, %s1403_s30, %s1404_s5  }
 0x1e4 PF: > { %s953_s6 = sand.u32 1, %s1374_s12   ;;  %p1689_p8 = scmp.ne.s32.totalorder %s1680_s23, 0 }
 0x1e5   : > { %p1690_p12 = scmp.ge.s32.totalorder %s1394_s17, 2  ;;  %s954_s21 = scalar_lea.sflag [#allocation5], %s953_s6 }
 0x1e7   : > { %p1194_p0 = pnand %p1690_p12, %p1689_p8 }
 0x1e9   : > { %p1195_p2 = pneg %p1194_p0 }
 0x1eb   : > { %1369 = dma.done.wait (%p1195_p2), %s954_s21, 256  }
 0x1ec   : > { %1371 = vsyncadd (%p1195_p2), %s954_s21, 4294967040  ;;  %s20_s17 = sadd.s32 1, %s1394_s17   ;;  %s1691_s12 = smov %s1378_s13 }
 0x1ed   : > { %p17_p3 = scmp.ge.s32.totalorder %s20_s17, 4   ;;  %s1692_s13 = smov %s1382_s14 }
 0x1ee   : > { %s1693_s14 = smov %s1524_s19  ;;  %s1694_s15 = smov %s1390_s16 }
 0x1ef   : > { %s1695_s16 = smov %s1697_s28  ;;  %19 = sbr.rel (!%p17_p3) target bundleno = 7 (0x7), region = 97 }
 0x1f4   :  { %959 = vsyncpa [#allocation4], 1 }
 0x1f5   :  { %961 = vsyncpa [#allocation4 + $0x1], 1 }
 0x1f6   :  { %962 = vsyncpa [#allocation7], 1 }
 0x1f7   :  { %963 = vsyncpa [#allocation5], 1 }
 0x1f8   :  { %965 = vsyncpa [#allocation5 + $0x1], 1 }

</bundles_post_ra>
